<compile_context>
chip_gen: v6e
topology: v6e:2x2x1
jax: 0.10.0
libtpu: 0.0.40
codegen_flags: <defaults>
</compile_context>

<pallas_src>
import jax
import jax.numpy as jnp
from jax.experimental import pallas as pl
from jax.experimental.pallas import tpu as pltpu


STATE_DIM = 4
IN_DIM = STATE_DIM * 2     # 8
HIDDEN = 256
OUT_DIM = 1


def mlp_kernel(x_ref, w1_ref, b1_ref, w2_ref, b2_ref, o_ref):
    # Layer 1 on the MXU: cast the (tb, IN_DIM) f32 tile to bf16 in-kernel,
    # f32 accumulate.
    x_bf = x_ref[...].astype(jnp.bfloat16)
    h = jnp.dot(x_bf, w1_ref[...], preferred_element_type=jnp.float32)
    # Bias + ReLU in f32 on the VPU.
    h = jnp.maximum(h + b1_ref[...], 0.0)
    # Layer 2 on the MXU, lane-dense: w2 (1, HIDDEN) contracted against h's
    # last dim -> (1, tb).  Same NT (q @ k^T) contraction pattern flash
    # attention uses, so no explicit transpose of h is materialized.
    out = jax.lax.dot_general(
        w2_ref[...], h.astype(jnp.bfloat16),
        dimension_numbers=(((1,), (1,)), ((), ())),
        preferred_element_type=jnp.float32)
    o_ref[0] = (out + b2_ref[0]).astype(o_ref.dtype)


def mlp_direct_policy_forward(x, w1_t_bf16, b1, w2_row_bf16, b2, *, tb=4096):
    """x: (B, IN_DIM) f32; w1_t_bf16: (IN_DIM, HIDDEN) bf16; b1: (1, HIDDEN) f32;
    w2_row_bf16: (1, HIDDEN) bf16; b2: (1,) f32.  Returns (B, OUT_DIM) f32."""
    B = x.shape[0]

    # Batch tile: multiple of 16 (bf16 sublane packing), capped at `tb`.
    b_round = pl.cdiv(B, 16) * 16
    tb = max(16, min(tb, b_round))
    if b_round > 16:
        # Prefer >= 2 (balanced) tiles so ("parallel",) actually feeds both
        # v7x TensorCores; no-op on single-TC v5e/v6e and at large B.
        half = pl.cdiv(b_round, 2 * 16) * 16
        tb = min(tb, max(16, half))

    num_tiles = pl.cdiv(b_round, tb)
    padded_b = num_tiles * tb
    if padded_b != B:
        # Pad only the ragged tail; skipped entirely when B is tile-aligned.
        x = jnp.pad(x, ((0, padded_b - B), (0, 0)))

    out = pl.pallas_call(
        mlp_kernel,
        out_shape=jax.ShapeDtypeStruct((num_tiles, 1, tb), jnp.float32),
        grid_spec=pl.GridSpec(
            grid=(num_tiles,),
            in_specs=[
                # x tile streams with the batch grid axis (f32, cast in-kernel).
                pl.BlockSpec((tb, IN_DIM), lambda i: (i, 0)),
                # Weights / biases: constant block index -> fetched once,
                # VMEM-resident across grid steps.
                pl.BlockSpec((IN_DIM, HIDDEN), lambda i: (0, 0)),
                pl.BlockSpec((1, HIDDEN), lambda i: (0, 0)),
                pl.BlockSpec((1, HIDDEN), lambda i: (0, 0)),
                # b2 is a single scalar: 1-D (1,) array in SMEM.
                pl.BlockSpec(memory_space=pltpu.MemorySpace.SMEM),
            ],
            # Lane-dense (1, 1, tb) output block -> unmasked full-lane stores.
            out_specs=pl.BlockSpec((1, 1, tb), lambda i: (i, 0, 0)),
        ),
        compiler_params=pltpu.CompilerParams(
            dimension_semantics=("parallel",),      # megacore-shard batch on v7x
            vmem_limit_bytes=32 * 1024 * 1024,       # covers v5e's 16 MiB default
        ),
    )(x, w1_t_bf16, b1, w2_row_bf16, b2)

    # (num_tiles, 1, tb) -> (padded_b, 1) is a contiguous row-major reshape.
    return out.reshape(padded_b, OUT_DIM)[:B]


def init_params(key):
    """Deterministic init mirroring torch.nn.Linear shapes
    (uniform(-1/sqrt(fan_in), 1/sqrt(fan_in)))."""
    k1, k2, k3, k4 = jax.random.split(key, 4)

    def uni(k, shape, fan_in):
        bound = 1.0 / jnp.sqrt(fan_in)
        return jax.random.uniform(k, shape, jnp.float32, -bound, bound)

    # linear1: weight (256, 8), bias (256,)
    w1 = uni(k1, (HIDDEN, IN_DIM), IN_DIM)
    b1 = uni(k2, (HIDDEN,), IN_DIM)
    # linear2: weight (1, 256), bias (1,)
    w2 = uni(k3, (OUT_DIM, HIDDEN), HIDDEN)
    b2 = uni(k4, (OUT_DIM,), HIDDEN)
    # TODO(synk): linear3 / sigmoid exist in the PyTorch __init__ but are
    # unused in forward(); not implemented.
    return w1, b1, w2, b2


def reference_forward(x, w1, b1, w2, b2):
    # Matches the kernel's numerics: layer-1 inputs and layer-2 inputs rounded
    # to bf16 (MXU feed), f32 accumulation.
    xb = x.astype(jnp.bfloat16).astype(jnp.float32)
    w1b = w1.astype(jnp.bfloat16).astype(jnp.float32)
    h = jnp.maximum(xb @ w1b.T + b1, 0.0)
    hb = h.astype(jnp.bfloat16).astype(jnp.float32)
    w2b = w2.astype(jnp.bfloat16).astype(jnp.float32)
    return hb @ w2b.T + b2


if __name__ == "__main__":
    key = jax.random.PRNGKey(0)
    kx, kp = jax.random.split(key)

    batch = 2
    x = jax.random.normal(kx, (batch, IN_DIM), jnp.float32)
    w1, b1, w2, b2 = init_params(kp)

    # Kernel-friendly layouts: pre-transposed bf16 w1, bf16 row-vector w2,
    # f32 (1, HIDDEN) b1, 1-D (1,) f32 b2 (lives in SMEM).
    w1_t_bf16 = jnp.transpose(w1).astype(jnp.bfloat16)        # (IN_DIM, HIDDEN)
    b1_r = b1.reshape(1, HIDDEN)                               # (1, HIDDEN) f32
    w2_row_bf16 = w2.reshape(1, HIDDEN).astype(jnp.bfloat16)   # (1, HIDDEN) bf16
    b2_r = b2.reshape(1,)                                      # (1,) f32

    out = mlp_direct_policy_forward(x, w1_t_bf16, b1_r, w2_row_bf16, b2_r)
    out = jax.block_until_ready(out)

    ref = reference_forward(x, w1, b1, w2, b2)
    assert out.shape == (batch, OUT_DIM), out.shape
    assert jnp.allclose(out, ref, atol=2e-3, rtol=2e-3), (out, ref)

    print("KERNEL_OK")
</pallas_src>

<mosaic_0001>
module attributes {stable_mosaic.version = 11 : i64} {
  func.func @mlp_kernel(%arg0: i32, %arg1: memref<16x8xf32, #tpu.memory_space<vmem>>, %arg2: memref<8x256xbf16, #tpu.memory_space<vmem>>, %arg3: memref<1x256xf32, #tpu.memory_space<vmem>>, %arg4: memref<1x256xbf16, #tpu.memory_space<vmem>>, %arg5: memref<1xf32, #tpu.memory_space<smem>>, %arg6: memref<1x1x16xf32, #tpu.memory_space<vmem>>) attributes {dimension_semantics = [#tpu.dimension_semantics<parallel>], iteration_bounds = array<i64: 1>, scalar_prefetch = 0 : i64, scratch_operands = 0 : i64, tpu.core_type = #tpu.core_type<tc>, window_params = [{transform_indices = @transform_0, window_bounds = array<i64: 16, 8>}, {pipeline_mode = #tpu.pipeline_mode<synchronous>, transform_indices = @transform_1, window_bounds = array<i64: 8, 256>}, {pipeline_mode = #tpu.pipeline_mode<synchronous>, transform_indices = @transform_2, window_bounds = array<i64: 1, 256>}, {pipeline_mode = #tpu.pipeline_mode<synchronous>, transform_indices = @transform_3, window_bounds = array<i64: 1, 256>}, {transform_indices = @transform_4, window_bounds = array<i64: 1>}, {transform_indices = @transform_5, window_bounds = array<i64: 1, 1, 16>}]} {
    %c0 = arith.constant 0 : index
    %c0_0 = arith.constant 0 : index
    %0 = vector.load %arg1[%c0, %c0_0] : memref<16x8xf32, #tpu.memory_space<vmem>>, vector<16x8xf32>
    %1 = arith.truncf %0 : vector<16x8xf32> to vector<16x8xbf16>
    %c0_1 = arith.constant 0 : index
    %c0_2 = arith.constant 0 : index
    %2 = vector.load %arg2[%c0_1, %c0_2] : memref<8x256xbf16, #tpu.memory_space<vmem>>, vector<8x256xbf16>
    %cst = arith.constant dense<0.000000e+00> : vector<16x256xf32>
    %3 = tpu.matmul %1, %2, %cst {dimension_numbers = #tpu.dot_dimension_numbers<[1], [0], [0], [1], [0, 0, 1, 1], [], []>} : vector<16x8xbf16>, vector<8x256xbf16>, vector<16x256xf32> -> vector<16x256xf32>
    %c0_3 = arith.constant 0 : index
    %c0_4 = arith.constant 0 : index
    %4 = vector.load %arg3[%c0_3, %c0_4] : memref<1x256xf32, #tpu.memory_space<vmem>>, vector<1x256xf32>
    %5 = vector.broadcast %4 : vector<1x256xf32> to vector<16x256xf32>
    %6 = arith.addf %3, %5 : vector<16x256xf32>
    %cst_5 = arith.constant 0.000000e+00 : f32
    %7 = vector.broadcast %cst_5 : f32 to vector<16x256xf32>
    %8 = arith.maximumf %6, %7 : vector<16x256xf32>
    %c0_6 = arith.constant 0 : index
    %c0_7 = arith.constant 0 : index
    %9 = vector.load %arg4[%c0_6, %c0_7] : memref<1x256xbf16, #tpu.memory_space<vmem>>, vector<1x256xbf16>
    %10 = arith.truncf %8 : vector<16x256xf32> to vector<16x256xbf16>
    %cst_8 = arith.constant dense<0.000000e+00> : vector<1x16xf32>
    %11 = tpu.matmul %9, %10, %cst_8 {dimension_numbers = #tpu.dot_dimension_numbers<[1], [1], [0], [0], [0, 0, 1, 0], [], []>} : vector<1x256xbf16>, vector<16x256xbf16>, vector<1x16xf32> -> vector<1x16xf32>
    %c0_9 = arith.constant 0 : index
    %12 = memref.load %arg5[%c0_9] : memref<1xf32, #tpu.memory_space<smem>>
    %13 = vector.broadcast %12 : f32 to vector<1x16xf32>
    %14 = arith.addf %11, %13 : vector<1x16xf32>
    %c0_10 = arith.constant 0 : index
    %c0_11 = arith.constant 0 : index
    %c0_12 = arith.constant 0 : index
    %15 = vector.load %arg6[%c0_10, %c0_11, %c0_12] : memref<1x1x16xf32, #tpu.memory_space<vmem>>, vector<1x1x16xf32>
    %16 = vector.shape_cast %15 : vector<1x1x16xf32> to vector<1x16xf32>
    %17 = vector.shape_cast %14 : vector<1x16xf32> to vector<1x1x16xf32>
    tpu.vector_store %arg6[%c0_10, %c0_11, %c0_12], %17 {strides = array<i32>} : memref<1x1x16xf32, #tpu.memory_space<vmem>>, vector<1x1x16xf32>,
    return
  }
  func.func @transform_0(%arg0: i32) -> (i32, i32) {
    %c0_i32 = arith.constant 0 : i32
    %c0_i32_0 = arith.constant 0 : i32
    return %arg0, %c0_i32 : i32, i32
  }
  func.func @transform_1(%arg0: i32) -> (i32, i32) {
    %c0_i32 = arith.constant 0 : i32
    %c0_i32_0 = arith.constant 0 : i32
    %c0_i32_1 = arith.constant 0 : i32
    return %c0_i32, %c0_i32_0 : i32, i32
  }
  func.func @transform_2(%arg0: i32) -> (i32, i32) {
    %c0_i32 = arith.constant 0 : i32
    %c0_i32_0 = arith.constant 0 : i32
    %c0_i32_1 = arith.constant 0 : i32
    return %c0_i32, %c0_i32_0 : i32, i32
  }
  func.func @transform_3(%arg0: i32) -> (i32, i32) {
    %c0_i32 = arith.constant 0 : i32
    %c0_i32_0 = arith.constant 0 : i32
    %c0_i32_1 = arith.constant 0 : i32
    return %c0_i32, %c0_i32_0 : i32, i32
  }
  func.func @transform_4(%arg0: i32) -> i32 {
    %c0_i32 = arith.constant 0 : i32
    %c0_i32_0 = arith.constant 0 : i32
    return %c0_i32 : i32
  }
  func.func @transform_5(%arg0: i32) -> (i32, i32, i32) {
    %c0_i32 = arith.constant 0 : i32
    %c0_i32_0 = arith.constant 0 : i32
    %c0_i32_1 = arith.constant 0 : i32
    return %arg0, %c0_i32, %c0_i32_0 : i32, i32, i32
  }
}

</mosaic_0001>

<bundles_post_ra>
// kernel: tpu_custom_call.1
= control target key start
LH: loop header
LB: loop body
LE: loop exit
PB: predicated region body
PF: predicated region fallthrough
CT: control target
= control target key end

     0   :  { %vm48_vm0 = vcmask 1043456   ;;  %v220_v5 = vmov 0   ;;  %s274_s0 = inlined_call_operand.vmem [shape: f32[16,8], index: 0, kind: input, shape index: {}]   ;;  %s275_s1 = inlined_call_operand.vmem [shape: bf16[8,256], index: 1, kind: input, shape index: {}]   ;;  %s276_s2 = inlined_call_operand.vmem [shape: f32[1,256], index: 2, kind: input, shape index: {}]   ;;  %s277_s3 = inlined_call_operand.vmem [shape: bf16[1,256], index: 3, kind: input, shape index: {}]   ;;  %s278_s4 = inlined_call_operand.<no memory space> [shape: f32[1], index: 4, kind: input, shape index: {}]   ;;  %s279_s5 = inlined_call_operand.hbm [shape: f32[1,1,16], index: 5, kind: output, shape index: {}]  }
   0x1   :  { %v26_v0 = vld [vmem:[%s275_s1] sm:$0xff]  ;;  %v24_v2 = vld [vmem:[%s274_s0 + $0x8] sm:$0xff]  ;;  %87 = vmatprep.mubr.bf16.mxu0 %v220_v5 }
   0x2   :  { %v23_v1 = vld [vmem:[%s274_s0] sm:$0xff]  ;;  %v189_v3 = vcombine.high %v26_v0, %v26_v0  ;;  %v188_v4 = vcombine.low %v26_v0, %v26_v0 }
   0x3   :  { %11 = vsyncpa [#allocation4], 0  ;;  %v25_v7 = vpack.c.bf16 %v24_v2, %v23_v1  ;;  %vm44_vm1 = vcmask 64512   ;;  %v29_v8 = vlaneseq  ;;  %v221_v9 = vmov 1966171168   ;;  %s222_s26 = smov [#allocation3]  }
   0x4   :  { %190 = vmatprep.subr.msk.bf16.mxu0 %vm48_vm0, %v189_v3  ;;  %v50_v6 = vsel %vm48_vm0, %v188_v4, 0  ;;  %v117_v10 = vunpack.c.l.s4 %v221_v9  ;;  %v192_v12 = vld.sshfl [vmem:[%s277_s3] sm:$0x11 pattern:$0x75316420]  ;;  %v106_v37 = vstv %s278_s4  ;;  %s180_s27 = sshll.u32 %s222_s26, 4  ;;  %s181_s27 = int_to_ptr.vmem [resolvable:$true] %s180_s27 }
   0x5   :  { %70 = vmatpush1.bf16.msra.mxu0 %v50_v6  ;;  %v30_v11 = vshrl.u32 %v29_v8, 7  ;;  %v115_v14 = vcombine.high %v192_v12, %v192_v12  ;;  %v27_v20 = vld [vmem:[%s276_s2] sm:$0x3]  ;;  %vm172_vm2 = vcmask 122880   ;;  %s198_s28 = scalar_lea.vmem %s181_s27, 16  ;;  %s202_s29 = scalar_lea.vmem %s181_s27, 32 }
   0x6   :  { %v118_v13 = vunpack.c.0.s8 %v117_v10  ;;  %p199_p0 = scmp.ne.s32.totalorder %s181_s27, %s198_s28  ;;  %p203_p1 = scmp.lt.s32.totalorder %s181_s27, %s181_s27 }
   0x7   :  { %v35_v18 = vsub.s32 1, %v30_v11  ;;  %v31_v19 = vsub.s32 0, %v30_v11  ;;  %p204_p2 = scmp.lt.s32.totalorder %s202_s29, %s198_s28 }
   0x8   :  { %191 = vmatmul.mubr.msk.bf16.vlgmr.msra.gmra.mxu0 %vm44_vm1, %v25_v7  ;;  %v121_v15 = vsub.s32 %v118_v13, %v30_v11 }
   0x9   :  { %v36_v22 = vrot.slane %v27_v20, %v35_v18  ;;  %v32_v23 = vrot.slane %v27_v20, %v31_v19  ;;  %p205_p3 = por %p204_p2, %p203_p1 }
   0xa   :  { %v129_v16 = vrot.slane %v115_v14, %v121_v15  ;;  %v122_v17 = vrot.slane %v192_v12, %v121_v15 }
   0xb   :  { %p206_p4 = pnand %p205_p3, %p199_p0 }
   0xc   :  { %164 = vmatprep.mubr.bf16.mxu1 %v129_v16 }
  0xc8   :  { %v89_v21 = vpop.f32.mrf.mxu0 }
  0xc9   :  { %v90_v28 = vadd.f32 %v89_v21, %v32_v23 }
  0xca   :  { %v91_v24 = vpop.f32.mrf.mxu0 }
  0xcb   :  { %v92_v26 = vadd.f32 %v91_v24, %v36_v22  ;;  %v98_v34 = vmax.f32 %v90_v28, 0.0 }
  0xcc   :  { %v93_v25 = vpop.f32.mrf.mxu0 }
  0xcd   :  { %v94_v27 = vadd.f32 %v93_v25, %v32_v23  ;;  %v99_v32 = vmax.f32 %v92_v26, 0.0 }
  0xce   :  { %v95_v29 = vpop.f32.mrf.mxu0 }
  0xcf   :  { %v96_v30 = vadd.f32 %v95_v29, %v36_v22  ;;  %v100_v31 = vmax.f32 %v94_v27, 0.0 }
  0xd1   :  { %v101_v33 = vmax.f32 %v96_v30, 0.0  ;;  %v103_v36 = vpack.c.bf16 %v100_v31, %v98_v34 }
  0xd3   :  { %v104_v35 = vpack.c.bf16 %v101_v33, %v99_v32 }
  0xd5   :  { %146 = vmatprep.subr.bf16.mxu1 %v104_v35 }
  0xd6   :  { %147 = vmatpush1.bf16.xpose.msra.mxu1 %v103_v36 }
  0xdd   :  { %165 = vmatmul.mubr.bf16.vlgmr.msra.gmra.mxu1 %v122_v17 }
 0x19d   :  { %v166_v38 = vpop.f32.mrf.mxu1 }
 0x19e   :  { %v167_v39 = vadd.f32 %v166_v38, %v106_v37 }
 0x19f   :  { %v168_v40 = vpop.f32.mrf.mxu1 }
 0x1a0   :  { %173 = vst.msk [vmem:[#allocation3] sm:$0x1] %vm172_vm2, %v167_v39 }
 0x1a1   :  { %v169_v41 = vpop.f32.mrf.mxu1 }
 0x1a2   :  { %209 = shalt.err (!%p206_p4)
}
 0x1a3   :  { %183 = dma.vmem_to_hbm [thread:$0]  %s181_s27, 16, %s279_s5, [#allocation4]   ;;  %v170_v42 = vpop.f32.mrf.mxu1 }
 0x1a4   :  { %218 = dma.done.wait [#allocation4], 16  }
 0x1a5   :  { %219 = vsyncadd [#allocation4], 4294967280 }
 0x1a6   :  { %187 = vsyncpa [#allocation4], 1 }

</bundles_post_ra>
